<compile_context>
chip_gen: v5e
topology: v5e:2x2
jax: 0.10.0
libtpu: 0.0.40
codegen_flags: <defaults>
</compile_context>

<pallas_src>
import jax
import jax.numpy as jnp
from jax import lax
from jax.experimental import pallas as pl
from jax.experimental.pallas import tpu as pltpu

LANES = 128
SUBLANES = 8
SLICE_ROWS = 256                        # 256x128 f32 slice = 32 vregs per accumulation step
N_ACC = 2                               # independent (8,128) accumulators (breaks the add chain)
TARGET_BLOCK_BYTES = 8 * 1024 * 1024    # per input buffer; 16 MiB double-buffered
MIN_BLOCK_ROWS = 1024                   # 512 KiB f32 -- already ~85% of HBM roofline per step
TARGET_PAR_BLOCKS = 4                   # keep >= 2x TensorCores (v7x) worth of parallel blocks
VMEM_LIMIT_BYTES = 48 * 1024 * 1024     # < 64 MiB physical VMEM on v7x; room for 2x8 MiB buffers


def _sharp_sum_f32(x):
    """Sum of the elementwise sharp loss in f32 (used for the tiny unaligned remainder)."""
    x = x.astype(jnp.float32)
    t = jnp.where(x < 0.5, x, x - 1.0)
    return jnp.sum(t * t)


def _max_block_rows(itemsize: int) -> int:
    rows = (TARGET_BLOCK_BYTES // (LANES * itemsize)) // SUBLANES * SUBLANES
    return max(SUBLANES, rows)


def _choose_block_rows(rows: int, max_rows: int) -> int:
    """rows, max_rows are multiples of 8; returns a multiple of 8 <= min(rows, max_rows)."""
    if rows <= TARGET_PAR_BLOCKS * MIN_BLOCK_ROWS:
        return min(rows, max_rows)
    num_blocks = max(TARGET_PAR_BLOCKS, -(-rows // max_rows))
    block_rows = (rows // num_blocks) // SUBLANES * SUBLANES
    return max(SUBLANES, min(block_rows, max_rows))


def _make_sharp_sum_kernel(block_rows: int):
    """Kernel: reduce one (block_rows, 128) block to an (8, 128) partial sum of the sharp loss."""
    slice_rows = min(SLICE_ROWS, block_rows)
    num_full = block_rows // slice_rows
    rem_rows = block_rows - num_full * slice_rows       # multiple of 8, < slice_rows
    n_acc = max(1, min(N_ACC, num_full))
    num_groups = num_full // n_acc
    leftover = num_full - num_groups * n_acc
    group_rows = n_acc * slice_rows

    def kernel(x_ref, psum_ref):
        def partial(start, nrows):
            # (nrows,128) slice -> per-(sublane,lane) sums. Pure VPU work, ~5 ops/element:
            # cmp + select + sub + mul + reduce-add. The reshape is layout-preserving.
            x = x_ref[pl.ds(start, nrows), :].astype(jnp.float32)
            t = jnp.where(x < 0.5, x, x - 1.0)
            sq = t * t
            return sq.reshape(nrows // SUBLANES, SUBLANES, LANES).sum(axis=0)

        zero = jnp.zeros((SUBLANES, LANES), jnp.float32)
        accs = [zero] * n_acc

        if num_groups > 0:
            def body(g, carry):
                base = g * group_rows
                return tuple(
                    acc + partial(pl.multiple_of(base + j * slice_rows, slice_rows), slice_rows)
                    for j, acc in enumerate(carry)
                )

            accs = list(lax.fori_loop(0, num_groups, body, tuple(accs),
                                      unroll=min(2, num_groups)))

        for j in range(leftover):                       # static leftover full slices
            start = (num_groups * n_acc + j) * slice_rows
            accs[j % n_acc] = accs[j % n_acc] + partial(start, slice_rows)

        if rem_rows:                                    # static sub-slice_rows remainder
            accs[-1] = accs[-1] + partial(num_full * slice_rows, rem_rows)

        total = accs[0]
        for acc in accs[1:]:
            total = total + acc
        psum_ref[...] = total

    return kernel


def image_sharp_loss(outputs: jax.Array, *, block_rows_cap=None) -> jax.Array:
    """Pallas implementation of ImageSharpLoss.forward (returns an f32 scalar)."""
    n_elems = outputs.size
    flat = outputs.reshape(-1)                          # free metadata reshape (contiguous input)

    tile = SUBLANES * LANES                             # 1024 elems -> one (8,128) row group
    rows = (n_elems // tile) * SUBLANES                 # multiple of 8
    if rows == 0:                                       # tiny input: plain jnp is optimal
        return _sharp_sum_f32(flat) / jnp.float32(n_elems)

    itemsize = outputs.dtype.itemsize
    max_rows = _max_block_rows(itemsize)
    if block_rows_cap is not None:                      # test hook: force small / many blocks
        max_rows = min(max_rows, max(SUBLANES, (block_rows_cap // SUBLANES) * SUBLANES))

    block_rows = _choose_block_rows(rows, max_rows)
    num_blocks = rows // block_rows
    rows_main = num_blocks * block_rows
    n_main = rows_main * LANES

    # Aligned, evenly-blocked prefix goes through Pallas (no pad copy, no block overhang).
    x_main = flat if n_main == n_elems else lax.slice(flat, (0,), (n_main,))
    x2d = x_main.reshape(rows_main, LANES)

    kernel = _make_sharp_sum_kernel(block_rows)
    cost = pl.CostEstimate(
        flops=5 * n_main,
        transcendentals=0,
        bytes_accessed=n_main * itemsize + num_blocks * SUBLANES * LANES * 4,
    )

    partials = pl.pallas_call(
        kernel,
        out_shape=jax.ShapeDtypeStruct((num_blocks, SUBLANES, LANES), jnp.float32),
        grid=(num_blocks,),
        in_specs=[pl.BlockSpec((block_rows, LANES), lambda i: (i, 0))],
        out_specs=pl.BlockSpec((None, SUBLANES, LANES), lambda i: (i, 0, 0)),
        compiler_params=pltpu.CompilerParams(
            dimension_semantics=("parallel",),          # independent blocks -> v7x dual-TC shard
            vmem_limit_bytes=VMEM_LIMIT_BYTES,
        ),
        cost_estimate=cost,
    )(x2d)

    total = jnp.sum(partials)                           # tiny cross-block + cross-lane reduce
    if n_main < n_elems:                                # leftover rows + unaligned tail, read once
        total = total + _sharp_sum_f32(flat[n_main:])
    return total / jnp.float32(n_elems)


def _reference(outputs: jax.Array) -> jax.Array:
    x = outputs.astype(jnp.float32)
    smaller = (x < 0.5) * x ** 2
    bigger = (x >= 0.5) * (x - 1.0) ** 2
    return jnp.mean(smaller + bigger)


def _check(x, **kwargs):
    out = jax.block_until_ready(image_sharp_loss(x, **kwargs))
    ref = jax.block_until_ready(_reference(x))
    assert jnp.allclose(out, ref, rtol=1e-4, atol=1e-6), (x.shape, x.dtype, kwargs, out, ref)


if __name__ == "__main__":
    key = jax.random.PRNGKey(0)
    k0, k1, k2, k3 = jax.random.split(key, 4)

    # Main case: small NCHW batch of sigmoid-style outputs in [0, 1).
    x = jax.random.uniform(k0, (2, 4, 16, 16), dtype=jnp.float32)
    _check(x)

    # Ragged size (n % 1024 != 0): exercises the jnp tail path.
    _check(jax.random.uniform(k1, (3, 5, 7, 11), dtype=jnp.float32))

    # Multi-block grid + leftover rows handled outside Pallas (small block-cap test hook).
    _check(jax.random.uniform(k2, (1, 1, 72, 128), dtype=jnp.float32), block_rows_cap=16)

    # In-kernel fori_loop groups + leftover slice + sub-slice remainder (rows = 2312).
    _check(jax.random.uniform(k3, (17, 17, 32, 32), dtype=jnp.float32))

    # Native bf16 streaming (halves HBM bytes); math still done in f32 inside the kernel.
    _check(jax.random.uniform(k0, (2, 4, 16, 16), dtype=jnp.float32).astype(jnp.bfloat16))

    print("KERNEL_OK")
</pallas_src>

<mosaic_0001>
module attributes {stable_mosaic.version = 11 : i64} {
  func.func @kernel(%arg0: i32, %arg1: memref<16x128xf32, #tpu.memory_space<vmem>>, %arg2: memref<1x8x128xf32, #tpu.memory_space<vmem>>) attributes {dimension_semantics = [#tpu.dimension_semantics<parallel>], iteration_bounds = array<i64: 1>, scalar_prefetch = 0 : i64, scratch_operands = 0 : i64, tpu.core_type = #tpu.core_type<tc>, window_params = [{transform_indices = @transform_0, window_bounds = array<i64: 16, 128>}, {transform_indices = @transform_1, window_bounds = array<i64: 1, 8, 128>}]} {
    %cst = arith.constant 0.000000e+00 : f32
    %0 = vector.broadcast %cst : f32 to vector<8x128xf32>
    %c0_i32 = arith.constant 0 : i32
    %c16_i32 = arith.constant 16 : i32
    %1 = arith.muli %c0_i32, %c16_i32 : i32
    %c0_i32_0 = arith.constant 0 : i32
    %2 = arith.addi %1, %c0_i32_0 : i32
    %3 = tpu.assume_multiple %2, 16 : i32
    %4 = arith.index_cast %3 : i32 to index
    %c0 = arith.constant 0 : index
    %5 = vector.load %arg1[%4, %c0] : memref<16x128xf32, #tpu.memory_space<vmem>>, vector<16x128xf32>
    %cst_1 = arith.constant 5.000000e-01 : f32
    %6 = vector.broadcast %cst_1 : f32 to vector<16x128xf32>
    %7 = arith.cmpf olt, %5, %6 : vector<16x128xf32>
    %cst_2 = arith.constant 1.000000e+00 : f32
    %8 = vector.broadcast %cst_2 : f32 to vector<16x128xf32>
    %9 = arith.subf %5, %8 : vector<16x128xf32>
    %10 = arith.select %7, %5, %9 : vector<16x128xi1>, vector<16x128xf32>
    %11 = arith.mulf %10, %10 : vector<16x128xf32>
    %12 = vector.shape_cast %11 : vector<16x128xf32> to vector<2x8x128xf32>
    %cst_3 = arith.constant dense<0.000000e+00> : vector<8x128xf32>
    %13 = vector.multi_reduction <add>, %12, %cst_3 [0] : vector<2x8x128xf32> to vector<8x128xf32>
    %14 = arith.addf %0, %13 : vector<8x128xf32>
    %c1_i32 = arith.constant 1 : i32
    %c0_4 = arith.constant 0 : index
    %c0_5 = arith.constant 0 : index
    %c0_6 = arith.constant 0 : index
    %15 = vector.load %arg2[%c0_4, %c0_5, %c0_6] : memref<1x8x128xf32, #tpu.memory_space<vmem>>, vector<1x8x128xf32>
    %16 = vector.shape_cast %15 : vector<1x8x128xf32> to vector<8x128xf32>
    %17 = vector.shape_cast %14 : vector<8x128xf32> to vector<1x8x128xf32>
    tpu.vector_store %arg2[%c0_4, %c0_5, %c0_6], %17 {strides = array<i32>} : memref<1x8x128xf32, #tpu.memory_space<vmem>>, vector<1x8x128xf32>,
    return
  }
  func.func @transform_0(%arg0: i32) -> (i32, i32) {
    %c0_i32 = arith.constant 0 : i32
    %c0_i32_0 = arith.constant 0 : i32
    return %arg0, %c0_i32 : i32, i32
  }
  func.func @transform_1(%arg0: i32) -> (i32, i32, i32) {
    %c0_i32 = arith.constant 0 : i32
    %c0_i32_0 = arith.constant 0 : i32
    %c0_i32_1 = arith.constant 0 : i32
    return %arg0, %c0_i32, %c0_i32_0 : i32, i32, i32
  }
}

</mosaic_0001>

<bundles_post_ra>
// kernel: tpu_custom_call.1
= control target key start
LH: loop header
LB: loop body
LE: loop exit
PB: predicated region body
PF: predicated region fallthrough
CT: control target
= control target key end

     0   :  { %6 = vsyncpa [#allocation3], 0  ;;  %s133_s0 = inlined_call_operand.hbm [shape: f32[16,128], index: 0, kind: input, shape index: {}]   ;;  %s134_s1 = inlined_call_operand.hbm [shape: f32[1,8,128], index: 1, kind: output, shape index: {}]  }
   0x1   :  { %7 = vsyncpa [#allocation4], 0  ;;  %s12_s8 = sshll.u32 %s133_s0, 4  ;;  %s113_s9 = smov [#allocation2]   ;;  %s13_s8 = int_to_ptr.hbm [resolvable:$true] %s12_s8 }
   0x2   :  { %s14_s10 = sshll.u32 %s113_s9, 4  ;;  %s114_s11 = smov 128   ;;  %s15_s10 = int_to_ptr.vmem [resolvable:$true] %s14_s10 }
   0x3   :  { %s115_s12 = smov 8  }
   0x4   :  { %20 = dma.hbm_to_vmem [thread:$0]  %s13_s8, 256, %s15_s10, [#allocation3], %s114_s11, %s114_s11, %s115_s12  }
   0x5   :  { %109 = dma.done.wait [#allocation3], 256  }
   0x6   :  { %110 = vsyncadd [#allocation3], 4294967040  ;;  %v25_v0 = vld [vmem:[#allocation2] sm:$0xff]  ;;  %v26_v1 = vld [vmem:[#allocation2 + $0x8] sm:$0xff]  ;;  %s116_s13 = smov [#allocation5]   ;;  %s45_s16 = sshll.u32 %s134_s1, 4  ;;  %s46_s16 = int_to_ptr.hbm [resolvable:$true] %s45_s16 }
   0x7   :  { %vm27_vm0 = vcmp.lt.f32.partialorder %v25_v0, 0.5  ;;  %vm28_vm1 = vcmp.lt.f32.partialorder %v26_v1, 0.5  ;;  %v55_v2 = vadd.f32 -1.0, %v25_v0  ;;  %v56_v3 = vadd.f32 -1.0, %v26_v1  ;;  %s43_s14 = sshll.u32 %s116_s13, 4  ;;  %s44_s14 = int_to_ptr.vmem [resolvable:$true] %s43_s14 }
   0x9   :  { %v31_v4 = vsel %vm27_vm0, %v25_v0, %v55_v2  ;;  %v32_v5 = vsel %vm28_vm1, %v26_v1, %v56_v3 }
   0xa   :  { %v33_v6 = vmul.f32 %v31_v4, %v31_v4  ;;  %v34_v7 = vmul.f32 %v32_v5, %v32_v5 }
   0xc   :  { %v35_v8 = vadd.f32 %v34_v7, %v33_v6 }
   0xe   :  { %37 = vst [vmem:[#allocation5] sm:$0xff] %v35_v8 }
   0xf   :  { %48 = dma.vmem_to_hbm [thread:$0]  %s44_s14, 128, %s46_s16, [#allocation4]  }
  0x10   :  { %111 = dma.done.wait [#allocation4], 128  }
  0x11   :  { %112 = vsyncadd [#allocation4], 4294967168 }
  0x12   :  { %53 = vsyncpa [#allocation3], 1 }
  0x13   :  { %54 = vsyncpa [#allocation4], 1 }

</bundles_post_ra>
